<compile_context>
chip_gen: v5e
topology: v5e:2x2
jax: 0.10.0
libtpu: 0.0.40
codegen_flags: <defaults>
</compile_context>

<pallas_src>
import math

import jax
import jax.numpy as jnp
from jax.experimental import pallas as pl
from jax.experimental.pallas import tpu as pltpu


_SLAB_BUDGET_BYTES = 6 << 20     # one batch-invariant slab (rows_block, lane)
_BLOCK_BUDGET_BYTES = 12 << 20   # out block = B_tile * slab
_VMEM_LIMIT_BYTES = 44 << 20     # < 64 MiB (v7x per-TC physical), << 128 MiB (v5e/v6e)


def _sublane_quantum(dtype):
    """Sublane alignment quantum for the second-to-last block dim."""
    return {4: 8, 2: 16, 1: 32}.get(jnp.dtype(dtype).itemsize, 8)


def _plan(shape, embd_dim, B, dtype):
    """Choose (tile_t, B_tile) so blocks are big (amortize per-step overhead)
    yet the live VMEM (2x double-buffered out block + build temporaries) stays
    comfortably under _VMEM_LIMIT_BYTES, and the grid has >=2 blocks when
    possible (v7x megacore)."""
    n_dim = len(shape)
    itemsize = jnp.dtype(dtype).itemsize
    sub = _sublane_quantum(dtype)
    s_last = shape[-1]
    lane = s_last * embd_dim

    if n_dim == 1:
        tile_t, num_t, rows_block, rows_total = 1, 1, 1, 1
    else:
        d0 = shape[0]
        rows_per_t = math.prod(shape[1:-1])          # == 1 when n_dim == 2
        rows_total = d0 * rows_per_t
        legal = [t for t in range(1, d0 + 1)
                 if d0 % t == 0 and (t == d0 or (t * rows_per_t) % sub == 0)]
        fitting = [t for t in legal
                   if t * rows_per_t * lane * itemsize <= _SLAB_BUDGET_BYTES]
        tile_t = max(fitting) if fitting else min(legal)
        num_t = d0 // tile_t
        rows_block = tile_t * rows_per_t

    slab_bytes = rows_block * lane * itemsize
    b_divs = [b for b in range(1, B + 1) if B % b == 0]
    fitting_b = [b for b in b_divs if b * slab_bytes <= _BLOCK_BUDGET_BYTES] or [1]
    B_tile = max(fitting_b)
    # Guarantee >= 2 grid blocks when the problem has >= 2 natural pieces,
    # so both v7x TensorCores can drive HBM stores.
    if num_t * (B // B_tile) < 2:
        smaller = [b for b in fitting_b if b < B]
        if smaller:
            B_tile = max(smaller)
    num_b = B // B_tile

    # Table-0 gets its own BlockSpec only if the t-tile is sublane-aligned
    # (otherwise the full tiny table is loaded and pl.ds-sliced in-kernel).
    t_is_blocked = (n_dim >= 2 and num_t > 1 and tile_t % sub == 0)

    return dict(tile_t=tile_t, num_t=num_t, rows_block=rows_block,
                rows_total=rows_total, lane=lane, B_tile=B_tile, num_b=num_b,
                t_is_blocked=t_is_blocked)


def _make_kernel(shape, embd_dim, plan):
    """Kernel specialized (at trace time) to shape / embd_dim / tiling.

    Each grid step (ti, bi) is fully independent: it rebuilds the
    batch-invariant slab for t-tile `ti` in registers and writes it to all
    B_tile batch slots of its output block. No scratch persistence, no grid
    ordering invariant -> both grid axes are safe to mark "parallel".
    """
    n_dim = len(shape)
    chunk = embd_dim // n_dim
    s_last = shape[-1]
    tile_t = plan["tile_t"]
    num_t = plan["num_t"]
    rows_block = plan["rows_block"]
    B_tile = plan["B_tile"]
    t_is_blocked = plan["t_is_blocked"]
    outer_block = ((tile_t,) + tuple(shape[1:-1])) if n_dim >= 2 else ()

    def kernel(*refs):
        emb_refs = refs[:n_dim]       # small VMEM tables (one per spatial dim)
        out_ref = refs[n_dim]         # (B_tile, rows_block, lane) lane-dense block

        # Row patterns for the "outer" spatial dims: (rows_block, chunk) each.
        outer_pieces = []
        for j in range(n_dim - 1):
            if j == 0 and num_t > 1 and not t_is_blocked:
                start = pl.multiple_of(pl.program_id(0) * tile_t, tile_t)
                e = emb_refs[0][pl.ds(start, tile_t), :]          # (tile_t, chunk)
            else:
                e = emb_refs[j][...]                              # (tile_t or d_j, chunk)
            view = tuple(outer_block[k] if k == j else 1
                         for k in range(n_dim - 1)) + (chunk,)
            e = jnp.broadcast_to(e.reshape(view), outer_block + (chunk,))
            outer_pieces.append(e.reshape(rows_block, chunk))

        if len(outer_pieces) > 1:
            outer = jnp.concatenate(outer_pieces, axis=-1)        # (rows_block, (n-1)*chunk)
        elif outer_pieces:
            outer = outer_pieces[0]
        else:
            outer = None                                          # n_dim == 1

        # Assemble the full lane-dense slab in registers with one concatenate:
        # slab[:, w*embd_dim:(w+1)*embd_dim] = [outer | e_inner[w] broadcast].
        e_inner = emb_refs[n_dim - 1][...]                        # (s_last, chunk)
        pieces = []
        for w in range(s_last):
            if outer is not None:
                pieces.append(outer)
            pieces.append(jnp.broadcast_to(e_inner[w:w + 1, :], (rows_block, chunk)))
        slab = pieces[0] if len(pieces) == 1 else jnp.concatenate(pieces, axis=-1)

        # Lane-dense write of the slab to every batch slot of the block; the
        # block is then DMA'd to HBM by the BlockSpec pipeline.
        for bb in range(B_tile):
            out_ref[bb] = slab

    return kernel


def broadcast_pos_embd_nd(x, emb_weights, shape, embd_dim):
    """Pallas equivalent of BroadcastPosEmbedND.forward(x).

    x:            only x.shape[0] (batch) is used, matching the torch module.
    emb_weights:  list of n_dim arrays, emb_weights[i].shape == (shape[i], embd_dim // n_dim)
    returns:      (B, *shape, embd_dim) array of the weights' dtype.
    """
    shape = tuple(int(s) for s in shape)
    n_dim = len(shape)
    assert embd_dim % n_dim == 0, f"{embd_dim} % {n_dim} != 0"
    assert len(emb_weights) == n_dim
    chunk = embd_dim // n_dim
    for i in range(n_dim):
        assert tuple(emb_weights[i].shape) == (shape[i], chunk)
    B = int(x.shape[0])
    dtype = emb_weights[0].dtype
    itemsize = jnp.dtype(dtype).itemsize

    plan = _plan(shape, embd_dim, B, dtype)
    kernel = _make_kernel(shape, embd_dim, plan)

    in_specs = []
    for j in range(n_dim):
        if j == 0 and plan["t_is_blocked"]:
            in_specs.append(pl.BlockSpec((plan["tile_t"], chunk),
                                         lambda ti, bi: (ti, 0)))
        else:
            in_specs.append(pl.BlockSpec(tuple(emb_weights[j].shape),
                                         lambda ti, bi: (0, 0)))

    out_bytes = B * plan["rows_total"] * plan["lane"] * itemsize
    in_bytes = sum(int(w.size) * itemsize for w in emb_weights)

    out2d = pl.pallas_call(
        kernel,
        out_shape=jax.ShapeDtypeStruct((B, plan["rows_total"], plan["lane"]), dtype),
        grid=(plan["num_t"], plan["num_b"]),
        in_specs=in_specs,
        out_specs=pl.BlockSpec((plan["B_tile"], plan["rows_block"], plan["lane"]),
                               lambda ti, bi: (bi, ti, 0)),
        compiler_params=pltpu.CompilerParams(
            dimension_semantics=("parallel", "parallel"),
            vmem_limit_bytes=_VMEM_LIMIT_BYTES),
        cost_estimate=pl.CostEstimate(
            flops=0, transcendentals=0, bytes_accessed=out_bytes + in_bytes),
    )(*emb_weights)

    # Free layout plumbing back to the module's output shape (row-major order
    # of (B, rows, lane) and (B, *shape, embd_dim) is identical).
    return out2d.reshape((B,) + shape + (embd_dim,))


def _reference(x, emb_weights, shape, embd_dim):
    """Pure-JAX reference mirroring the PyTorch forward exactly."""
    n_dim = len(shape)
    B = x.shape[0]
    embs = []
    for i in range(n_dim):
        e = emb_weights[i]  # (shape[i], chunk) == embedding(arange(shape[i]))
        view = (1,) + (1,) * i + (shape[i],) + (1,) * (n_dim - i - 1) + (-1,)
        e = jnp.broadcast_to(e.reshape(view), (B, *shape, e.shape[-1]))
        embs.append(e)
    return jnp.concatenate(embs, axis=-1)


if __name__ == "__main__":
    # Small shapes consistent with the module: 3 spatial dims (T, H, W).
    shape = (4, 8, 8)
    embd_dim = 48          # divisible by n_dim=3 -> per-dim chunk = 16
    B = 2
    n_dim = len(shape)
    chunk = embd_dim // n_dim

    key = jax.random.PRNGKey(0)
    keys = jax.random.split(key, n_dim + 1)
    # Deterministic init matching nn.Embedding.weight.data.normal_(std=0.01)
    emb_weights = [
        (0.01 * jax.random.normal(keys[i], (shape[i], chunk), jnp.float32))
        for i in range(n_dim)
    ]
    # x is only consulted for its batch size (same as the torch module).
    x = jax.random.normal(keys[-1], (B, *shape, embd_dim), jnp.float32)

    out = broadcast_pos_embd_nd(x, emb_weights, shape, embd_dim)
    out = jax.block_until_ready(out)

    ref = _reference(x, emb_weights, shape, embd_dim)
    assert out.shape == (B, *shape, embd_dim), out.shape
    assert out.dtype == jnp.float32
    assert bool(jnp.allclose(out, ref, atol=1e-6)), "mismatch vs reference"

    print("KERNEL_OK")
</pallas_src>

<mosaic_0001>
module attributes {stable_mosaic.version = 11 : i64} {
  func.func @kernel(%arg0: i32, %arg1: i32, %arg2: memref<4x16xf32, #tpu.memory_space<vmem>>, %arg3: memref<8x16xf32, #tpu.memory_space<vmem>>, %arg4: memref<8x16xf32, #tpu.memory_space<vmem>>, %arg5: memref<1x32x384xf32, #tpu.memory_space<vmem>>) attributes {dimension_semantics = [#tpu.dimension_semantics<parallel>, #tpu.dimension_semantics<parallel>], iteration_bounds = array<i64: 1, 2>, scalar_prefetch = 0 : i64, scratch_operands = 0 : i64, tpu.core_type = #tpu.core_type<tc>, window_params = [{pipeline_mode = #tpu.pipeline_mode<synchronous>, transform_indices = @transform_0, window_bounds = array<i64: 4, 16>}, {pipeline_mode = #tpu.pipeline_mode<synchronous>, transform_indices = @transform_1, window_bounds = array<i64: 8, 16>}, {pipeline_mode = #tpu.pipeline_mode<synchronous>, transform_indices = @transform_2, window_bounds = array<i64: 8, 16>}, {transform_indices = @transform_3, window_bounds = array<i64: 1, 32, 384>}]} {
    %c0 = arith.constant 0 : index
    %c0_0 = arith.constant 0 : index
    %0 = vector.load %arg2[%c0, %c0_0] : memref<4x16xf32, #tpu.memory_space<vmem>>, vector<4x16xf32>
    %1 = vector.shape_cast %0 : vector<4x16xf32> to vector<4x1x16xf32>
    %2 = vector.shape_cast %1 : vector<4x1x16xf32> to vector<4x1x16xf32>
    %3 = vector.broadcast %2 : vector<4x1x16xf32> to vector<4x8x16xf32>
    %4 = vector.shape_cast %3 : vector<4x8x16xf32> to vector<32x16xf32>
    %c0_1 = arith.constant 0 : index
    %c0_2 = arith.constant 0 : index
    %5 = vector.load %arg3[%c0_1, %c0_2] : memref<8x16xf32, #tpu.memory_space<vmem>>, vector<8x16xf32>
    %6 = vector.shape_cast %5 : vector<8x16xf32> to vector<1x8x16xf32>
    %7 = vector.shape_cast %6 : vector<1x8x16xf32> to vector<1x8x16xf32>
    %8 = vector.broadcast %7 : vector<1x8x16xf32> to vector<4x8x16xf32>
    %9 = vector.shape_cast %8 : vector<4x8x16xf32> to vector<32x16xf32>
    %10 = tpu.concatenate %4, %9 in 1 : vector<32x16xf32>, vector<32x16xf32> -> vector<32x32xf32>
    %c0_3 = arith.constant 0 : index
    %c0_4 = arith.constant 0 : index
    %11 = vector.load %arg4[%c0_3, %c0_4] : memref<8x16xf32, #tpu.memory_space<vmem>>, vector<8x16xf32>
    %12 = vector.extract_strided_slice %11 {offsets = [0, 0], sizes = [1, 16], strides = [1, 1]} : vector<8x16xf32> to vector<1x16xf32>
    %13 = vector.shape_cast %12 : vector<1x16xf32> to vector<1x16xf32>
    %14 = vector.broadcast %13 : vector<1x16xf32> to vector<32x16xf32>
    %15 = vector.extract_strided_slice %11 {offsets = [1, 0], sizes = [1, 16], strides = [1, 1]} : vector<8x16xf32> to vector<1x16xf32>
    %16 = vector.shape_cast %15 : vector<1x16xf32> to vector<1x16xf32>
    %17 = vector.broadcast %16 : vector<1x16xf32> to vector<32x16xf32>
    %18 = vector.extract_strided_slice %11 {offsets = [2, 0], sizes = [1, 16], strides = [1, 1]} : vector<8x16xf32> to vector<1x16xf32>
    %19 = vector.shape_cast %18 : vector<1x16xf32> to vector<1x16xf32>
    %20 = vector.broadcast %19 : vector<1x16xf32> to vector<32x16xf32>
    %21 = vector.extract_strided_slice %11 {offsets = [3, 0], sizes = [1, 16], strides = [1, 1]} : vector<8x16xf32> to vector<1x16xf32>
    %22 = vector.shape_cast %21 : vector<1x16xf32> to vector<1x16xf32>
    %23 = vector.broadcast %22 : vector<1x16xf32> to vector<32x16xf32>
    %24 = vector.extract_strided_slice %11 {offsets = [4, 0], sizes = [1, 16], strides = [1, 1]} : vector<8x16xf32> to vector<1x16xf32>
    %25 = vector.shape_cast %24 : vector<1x16xf32> to vector<1x16xf32>
    %26 = vector.broadcast %25 : vector<1x16xf32> to vector<32x16xf32>
    %27 = vector.extract_strided_slice %11 {offsets = [5, 0], sizes = [1, 16], strides = [1, 1]} : vector<8x16xf32> to vector<1x16xf32>
    %28 = vector.shape_cast %27 : vector<1x16xf32> to vector<1x16xf32>
    %29 = vector.broadcast %28 : vector<1x16xf32> to vector<32x16xf32>
    %30 = vector.extract_strided_slice %11 {offsets = [6, 0], sizes = [1, 16], strides = [1, 1]} : vector<8x16xf32> to vector<1x16xf32>
    %31 = vector.shape_cast %30 : vector<1x16xf32> to vector<1x16xf32>
    %32 = vector.broadcast %31 : vector<1x16xf32> to vector<32x16xf32>
    %33 = vector.extract_strided_slice %11 {offsets = [7, 0], sizes = [1, 16], strides = [1, 1]} : vector<8x16xf32> to vector<1x16xf32>
    %34 = vector.shape_cast %33 : vector<1x16xf32> to vector<1x16xf32>
    %35 = vector.broadcast %34 : vector<1x16xf32> to vector<32x16xf32>
    %36 = tpu.concatenate %10, %14, %10, %17, %10, %20, %10, %23, %10, %26, %10, %29, %10, %32, %10, %35 in 1 : vector<32x32xf32>, vector<32x16xf32>, vector<32x32xf32>, vector<32x16xf32>, vector<32x32xf32>, vector<32x16xf32>, vector<32x32xf32>, vector<32x16xf32>, vector<32x32xf32>, vector<32x16xf32>, vector<32x32xf32>, vector<32x16xf32>, vector<32x32xf32>, vector<32x16xf32>, vector<32x32xf32>, vector<32x16xf32> -> vector<32x384xf32>
    %c0_5 = arith.constant 0 : index
    %c0_6 = arith.constant 0 : index
    %c0_7 = arith.constant 0 : index
    %37 = vector.load %arg5[%c0_5, %c0_6, %c0_7] : memref<1x32x384xf32, #tpu.memory_space<vmem>>, vector<1x32x384xf32>
    %38 = vector.shape_cast %37 : vector<1x32x384xf32> to vector<32x384xf32>
    %39 = vector.shape_cast %36 : vector<32x384xf32> to vector<1x32x384xf32>
    tpu.vector_store %arg5[%c0_5, %c0_6, %c0_7], %39 {strides = array<i32>} : memref<1x32x384xf32, #tpu.memory_space<vmem>>, vector<1x32x384xf32>,
    return
  }
  func.func @transform_0(%arg0: i32, %arg1: i32) -> (i32, i32) {
    %c0_i32 = arith.constant 0 : i32
    %c0_i32_0 = arith.constant 0 : i32
    %c0_i32_1 = arith.constant 0 : i32
    return %c0_i32, %c0_i32_0 : i32, i32
  }
  func.func @transform_1(%arg0: i32, %arg1: i32) -> (i32, i32) {
    %c0_i32 = arith.constant 0 : i32
    %c0_i32_0 = arith.constant 0 : i32
    %c0_i32_1 = arith.constant 0 : i32
    return %c0_i32, %c0_i32_0 : i32, i32
  }
  func.func @transform_2(%arg0: i32, %arg1: i32) -> (i32, i32) {
    %c0_i32 = arith.constant 0 : i32
    %c0_i32_0 = arith.constant 0 : i32
    %c0_i32_1 = arith.constant 0 : i32
    return %c0_i32, %c0_i32_0 : i32, i32
  }
  func.func @transform_3(%arg0: i32, %arg1: i32) -> (i32, i32, i32) {
    %c0_i32 = arith.constant 0 : i32
    %c0_i32_0 = arith.constant 0 : i32
    return %arg1, %arg0, %c0_i32 : i32, i32, i32
  }
}

</mosaic_0001>

<bundles_post_ra>
// kernel: tpu_custom_call.1
= control target key start
LH: loop header
LB: loop body
LE: loop exit
PB: predicated region body
PF: predicated region fallthrough
CT: control target
= control target key end

     0   :  { %8 = vsyncpa [#allocation3], 0  ;;  %s1153_s0 = inlined_call_operand.hbm [shape: f32[4,16], index: 0, kind: input, shape index: {}]   ;;  %s1154_s1 = inlined_call_operand.hbm [shape: f32[8,16], index: 1, kind: input, shape index: {}]   ;;  %s1155_s2 = inlined_call_operand.hbm [shape: f32[8,16], index: 2, kind: input, shape index: {}]   ;;  %s1156_s3 = inlined_call_operand.hbm [shape: f32[2,32,384], index: 3, kind: output, shape index: {}]  }
   0x1   :  { %9 = vsyncpa [#allocation6], 0 }
   0x2   :  { %10 = vsyncpa [#allocation4], 0 }
   0x3   :  { %12 = vsyncpa [#allocation4 + $0x1], 0  ;;  %s861_s12 = smov 0   ;;  %s863_s13 = smov 0  }
   0x4   :  { %s865_s14 = smov 0   ;;  %s867_s15 = smov 0  }
   0x5   :  { %s869_s16 = smov 0   ;;  %s871_s17 = smov 0  }
   0x6 LB: > { %s541_s18 = sadd.s32 4294967295, %s827_s17   ;;  %s542_s19 = sadd.s32 4294967294, %s827_s17   ;;  %s827_s17 = sphi %s871_s17, %s18_s17   ;;  %s823_s16 = sphi %s869_s16, %s1166_s16   ;;  %s819_s15 = sphi %s867_s15, %s1165_s15   ;;  %s815_s14 = sphi %s865_s14, %s1164_s14   ;;  %s811_s13 = sphi %s863_s13, %s1163_s13   ;;  %s807_s12 = sphi %s861_s12, %s1162_s12  }
   0x7   : > { %s27_s20 = sadd.s32 1, %s823_s16  ;;  %s102_s21 = sadd.s32 1, %s815_s14 }
   0x8   : > { %p28_p0 = scmp.ge.s32.totalorder %s27_s20, 2  ;;  %p112_p1 = scmp.ne.s32.totalorder %s815_s14, %s811_s13 }
   0x9   : > { %p113_p2 = scmp.eq.s32.totalorder %s541_s18, 1  ;;  %p118_p3 = scmp.ne.s32.totalorder %s811_s13, %s807_s12 }
   0xa   : > { %s1168_s20 = smov (%p28_p0, %s27_s20), 0  ;;  %p119_p5 = scmp.eq.s32.totalorder %s542_s19, 1 }
   0xb   : > { %p901_p4 = por %p113_p2, %p112_p1  ;;  %s97_s23 = ssub.s32 %s823_s16, %s1168_s20 }
   0xc   : > { %p543_p6 = scmp.ge.s32.totalorder %s827_s17, 1  ;;  %p100_p7 = scmp.eq.s32.totalorder %s97_s23, 0 }
   0xd   : > { %p908_p8 = por %p119_p5, %p118_p3  ;;  %p126_p9 = scmp.lt.s32.totalorder %s827_s17, 3 }
   0xe   : > { %s914_s25 = scalar_select %p100_p7, %s815_s14, %s102_s21  }
   0xf   : > { %p916_p10 = pnand %p543_p6, %p126_p9  ;;  %p920_p11 = scmp.eq.s32.totalorder %s541_s18, 0 }
  0x10   : > { %s150_s30 = sshll.u32 %s1154_s1, 4  ;;  %s829_s4 = smov [#allocation5]   ;;  %s151_s30 = int_to_ptr.hbm [resolvable:$true] %s150_s30 }
  0x11   : > { %p570_p12 = pneg %p916_p10  ;;  %s152_s5 = sshll.u32 %s829_s4, 4  ;;  %s153_s5 = int_to_ptr.vmem [resolvable:$true] %s152_s5 }
  0x12   : > { %s138_s9 = sshll.u32 %s1153_s0, 4  ;;  %s162_s18 = sshll.u32 %s1155_s2, 4  ;;  %s139_s9 = int_to_ptr.hbm [resolvable:$true] %s138_s9  ;;  %s163_s18 = int_to_ptr.hbm [resolvable:$true] %s162_s18 }
  0x13   : > { %p931_p13 = pnand %p920_p11, %p570_p12  ;;  %s830_s19 = smov [#allocation2]  }
  0x14   : > { %s140_s21 = sshll.u32 %s830_s19, 4  ;;  %s831_s23 = smov [#allocation7]   ;;  %s141_s21 = int_to_ptr.vmem [resolvable:$true] %s140_s21 }
  0x15   : > { %576 = dma.hbm_to_vmem [thread:$0]  (!%p931_p13), %s151_s30, 128, %s153_s5, [#allocation6]  }
  0x16   : > { %573 = dma.hbm_to_vmem [thread:$0]  (!%p931_p13), %s139_s9, 64, %s141_s21, [#allocation3]  }
  0x17   : > { %s164_s28 = sshll.u32 %s831_s23, 4  ;;  %177 = sbr.rel (%p916_p10) target bundleno = 349 (0x15d), region = 32  ;;  %s165_s28 = int_to_ptr.vmem [resolvable:$true] %s164_s28 }
  0x18   : > { %579 = dma.hbm_to_vmem [thread:$0]  (!%p931_p13), %s163_s18, 128, %s165_s28, [#allocation6]  }
  0x1c   : > { %794 = dma.done.wait (%p920_p11), [#allocation3], 64  }
  0x1d   : > { %796 = vsyncadd (%p920_p11), [#allocation3], 4294967232 }
  0x1e   : > { %798 = dma.done.wait (%p920_p11), [#allocation6], 256  }
  0x1f   : > { %800 = vsyncadd (%p920_p11), [#allocation6], 4294967040  ;;  %v221_v0 = vld [vmem:[#allocation5] sm:$0xff]  ;;  %v957_v1 = vld [vmem:[#allocation7] sm:$0xff]  ;;  %s832_s29 = smov 16   ;;  %s833_s26 = smov 96  }
  0x20   : > { %223 = vrot.lane.b32.xlu0 %v221_v0, %s832_s29  ;;  %v237_v2 = vperm.slane %v957_v1, 5  ;;  %v236_v3 = vperm.slane %v957_v1, 4  ;;  %v232_v4 = vperm.slane %v957_v1, 0  ;;  %s834_s30 = smov 32   ;;  %v233_v5 = vperm.slane %v957_v1, 1  ;;  %s835_s27 = smov 80  }
  0x21   : > { %v235_v6 = vperm.slane %v957_v1, 3  ;;  %s836_s4 = smov 48   ;;  %v238_v7 = vperm.slane %v957_v1, 6  ;;  %s837_s5 = smov 64   ;;  %v208_v8 = vld [vmem:[#allocation2] sm:$0xf] }
  0x22   : > { %321 = vrot.lane.b32.xlu1 %v237_v2, %s832_s29  ;;  %305 = vrot.lane.b32.xlu2 %v236_v3, %s833_s26  ;;  %v211_v9 = vrot.slane %v208_v8, 2  ;;  %v213_v10 = vperm.slane %v208_v8, 0  ;;  %vm226_vm0 = vcmask 130048   ;;  %v210_v13 = vrot.slane %v208_v8, 1  ;;  %s838_s6 = smov 112   ;;  %s204_s7 = sand.u32 1, %s811_s13  }
  0x23   : > { %v212_v16 = vrot.slane %v208_v8, 3  ;;  %v239_v22 = vperm.slane %v957_v1, 7  ;;  %vm356_vm1 = vcmask 261120   ;;  %vm361_vm2 = vcmask 392192   ;;  %s554_s8 = smul.u32 96, %s204_s7  ;;  %s431_s23 = scalar_lea.sflag [#allocation4], %s204_s7 }
  0x24   : > { %v215_v11 = vperm.slane %v211_v9, 0  ;;  %v214_v17 = vperm.slane %v210_v13, 0  ;;  %vm366_vm3 = vcmask 654336   ;;  %vm371_vm4 = vcmask 785408   ;;  %s555_s10 = smul.u32 96, %s819_s15 }
  0x25   : > { %v216_v18 = vperm.slane %v212_v16, 0  ;;  %s1029_s9 = scalar_lea.vmem [#allocation8], %s554_s8  ;;  %v234_v58 = vperm.slane %v957_v1, 2  ;;  %vm384_vm5 = vcmask 523264   ;;  %vm393_vm6 = vcmask 916480  }
  0x26   : > { %s445_s19 = scalar_lea.hbm %s1156_s3, %s555_s10  ;;  %s446_s15 = sshll.u32 %s1029_s9, 4  ;;  %s447_s15 = int_to_ptr.vmem [resolvable:$true] %s446_s15 }
  0x27   : > { %s448_s21 = sshll.u32 %s445_s19, 4  ;;  %s449_s21 = int_to_ptr.hbm [resolvable:$true] %s448_s21 }
  0x28   : > { %241 = vrot.lane.b32.xlu0 %v232_v4, %s834_s30  ;;  %s755_s28 = sshra.s32 %s449_s21, 4  ;;  %s756_s28 = int_to_ptr.hbm [resolvable:$true] %s755_s28 }
  0x29   : > { %p762_p3 = scmp.lt.s32.totalorder %s756_s28, %s1156_s3 }
  0x30   : > { %261 = vrot.lane.b32.xlu0 %v233_v5, %s835_s27 }
  0x38   : > { %289 = vrot.lane.b32.xlu0 %v235_v6, %s836_s4 }
  0x40   : > { %337 = vrot.lane.b32.xlu0 %v238_v7, %s837_s5 }
  0x7c   : > { %v1014_v23 = vpop.permute.xlu2 %305 }
  0x92   : > { %v224_v12 = vpop.permute.xlu0 %223 }
  0x93   : > { %v972_v14 = vsel %vm226_vm0, %v213_v10, %v224_v12  ;;  %v229_v15 = vsel %vm226_vm0, %v215_v11, %v224_v12  ;;  %v228_v19 = vsel %vm226_vm0, %v214_v17, %v224_v12  ;;  %v979_v20 = vsel %vm226_vm0, %v216_v18, %v224_v12 }
  0x94   : > { %248 = vrot.lane.b32.xlu1 %v972_v14, %s836_s4  ;;  %268 = vrot.lane.b32.xlu0 %v229_v15, %s833_s26  ;;  %v1018_v28 = vpop.permute.xlu1 %321 }
  0x95   : > { %252 = vrot.lane.b32.xlu2 %v229_v15, %s836_s4 }
  0x9a   : > { %v242_v21 = vpop.permute.xlu0 %241 }
  0x9b   : > { %v359_v31 = vsel %vm356_vm1, %v229_v15, %v242_v21  ;;  %v358_v39 = vsel %vm356_vm1, %v228_v19, %v242_v21  ;;  %v357_v44 = vsel %vm356_vm1, %v972_v14, %v242_v21  ;;  %v360_v51 = vsel %vm356_vm1, %v979_v20, %v242_v21 }
  0x9c   : > { %278 = vrot.lane.b32.xlu0 %v228_v19, %s832_s29  ;;  %250 = vrot.lane.b32.xlu1 %v228_v19, %s836_s4 }
  0x9d   : > { %254 = vrot.lane.b32.xlu2 %v979_v20, %s836_s4 }
  0xa2   : > { %v262_v24 = vpop.permute.xlu0 %261 }
  0xa4   : > { %296 = vrot.lane.b32.xlu0 %v229_v15, %s837_s5  ;;  %264 = vrot.lane.b32.xlu1 %v972_v14, %s833_s26 }
  0xa5   : > { %266 = vrot.lane.b32.xlu2 %v228_v19, %s833_s26 }
  0xaa   : > { %v1016_v26 = vpop.permute.xlu0 %289 }
  0xac   : > { %308 = vrot.lane.b32.xlu0 %v972_v14, %s838_s6  ;;  %270 = vrot.lane.b32.xlu1 %v979_v20, %s833_s26 }
  0xad   : > { %276 = vrot.lane.b32.xlu2 %v972_v14, %s832_s29 }
  0xb2   : > { %v1020_v29 = vpop.permute.xlu0 %337 }
  0xb4   : > { %314 = vrot.lane.b32.xlu0 %v979_v20, %s838_s6  ;;  %280 = vrot.lane.b32.xlu1 %v229_v15, %s832_s29 }
  0xb5   : > { %282 = vrot.lane.b32.xlu2 %v979_v20, %s832_s29  ;;  %s757_s29 = scalar_lea.hbm %s756_s28, 96 }
  0xb6   : > { %p758_p0 = scmp.ne.s32.totalorder %s756_s28, %s757_s29 }
  0xb8   : > { %p759_p1 = pnand %p758_p0, %p901_p4 }
  0xba   : > { %p760_p2 = pneg %p759_p1 }
  0xbc   : > { %326 = vrot.lane.b32.xlu0 %v228_v19, %s834_s30  ;;  %292 = vrot.lane.b32.xlu1 %v972_v14, %s837_s5 }
  0xbd   : > { %294 = vrot.lane.b32.xlu2 %v228_v19, %s837_s5 }
  0xc4   : > { %344 = vrot.lane.b32.xlu0 %v229_v15, %s835_s27  ;;  %298 = vrot.lane.b32.xlu1 %v979_v20, %s837_s5 }
  0xc5   : > { %312 = vrot.lane.b32.xlu2 %v229_v15, %s838_s6 }
  0xcc   : > { %310 = vrot.lane.b32.xlu1 %v228_v19, %s838_s6 }
  0xcd   : > { %324 = vrot.lane.b32.xlu2 %v972_v14, %s834_s30 }
  0xd4   : > { %328 = vrot.lane.b32.xlu1 %v229_v15, %s834_s30 }
  0xd5   : > { %330 = vrot.lane.b32.xlu2 %v979_v20, %s834_s30 }
  0xdc   : > { %340 = vrot.lane.b32.xlu1 %v972_v14, %s835_s27 }
  0xdd   : > { %342 = vrot.lane.b32.xlu2 %v228_v19, %s835_s27 }
  0xe4   : > { %346 = vrot.lane.b32.xlu1 %v979_v20, %s835_s27  ;;  %s761_s27 = scalar_lea.hbm %s1156_s3, 192 }
  0xe5   : > { %353 = vrot.lane.b32.xlu2 %v239_v22, %s838_s6  ;;  %p763_p5 = scmp.lt.s32.totalorder %s761_s27, %s757_s29 }
  0xe7   : > { %p764_p6 = por %p763_p5, %p762_p3 }
  0xe9   : > { %p765_p7 = pnand %p764_p6, %p760_p2 }
  0xef   : > { %v253_v25 = vpop.permute.xlu2 %252 }
  0xf0   : > { %v364_v32 = vsel %vm361_vm2, %v359_v31, %v253_v25 }
  0xf1   : > { %v369_v35 = vsel %vm366_vm3, %v364_v32, %v262_v24 }
  0xf7   : > { %v255_v27 = vpop.permute.xlu2 %254 }
  0xf8   : > { %v365_v52 = vsel %vm361_vm2, %v360_v51, %v255_v27 }
  0xf9   : > { %v370_v53 = vsel %vm366_vm3, %v365_v52, %v262_v24 }
  0xff   : > { %v267_v30 = vpop.permute.xlu2 %266 }
 0x106   : > { %v249_v33 = vpop.permute.xlu1 %248  ;;  %v269_v34 = vpop.permute.xlu0 %268 }
 0x107   : > { %v374_v36 = vsel %vm371_vm4, %v369_v35, %v269_v34  ;;  %v277_v37 = vpop.permute.xlu2 %276  ;;  %v362_v45 = vsel %vm361_vm2, %v357_v44, %v249_v33 }
 0x108   : > { %424 = vst [vmem:[%s1029_s9 + $0x30] sm:$0xff] %v374_v36  ;;  %v367_v47 = vsel %vm366_vm3, %v362_v45, %v262_v24  ;;  %v376_v3 = vsel %vm226_vm0, %v234_v58, %v277_v37 }
 0x109   : > { %v380_v4 = vsel %vm361_vm2, %v376_v3, %v1016_v26 }
 0x10e   : > { %v251_v38 = vpop.permute.xlu1 %250  ;;  %v279_v46 = vpop.permute.xlu0 %278 }
 0x10f   : > { %v283_v40 = vpop.permute.xlu2 %282  ;;  %v363_v41 = vsel %vm361_vm2, %v358_v39, %v251_v38  ;;  %v377_v14 = vsel %vm226_vm0, %v234_v58, %v279_v46 }
 0x110   : > { %v368_v42 = vsel %vm366_vm3, %v363_v41, %v262_v24  ;;  %v379_v10 = vsel %vm226_vm0, %v234_v58, %v283_v40  ;;  %v381_v19 = vsel %vm361_vm2, %v377_v14, %v1016_v26 }
 0x111   : > { %v373_v43 = vsel %vm371_vm4, %v368_v42, %v267_v30  ;;  %v383_v12 = vsel %vm361_vm2, %v379_v10, %v1016_v26 }
 0x112   : > { %421 = vst [vmem:[%s1029_s9 + $0x18] sm:$0xff] %v373_v43 }
 0x116   : > { %v265_v48 = vpop.permute.xlu1 %264  ;;  %v297_v57 = vpop.permute.xlu0 %296 }
 0x117   : > { %v295_v49 = vpop.permute.xlu2 %294  ;;  %v372_v50 = vsel %vm371_vm4, %v367_v47, %v265_v48 }
 0x118   : > { %418 = vst [vmem:[%s1029_s9] sm:$0xff] %v372_v50  ;;  %v386_v20 = vsel %vm384_vm5, %v381_v19, %v295_v49 }
 0x119   : > { %v390_v22 = vsel %vm371_vm4, %v386_v20, %v1014_v23 }
 0x11e   : > { %v271_v54 = vpop.permute.xlu1 %270  ;;  %v309_v0 = vpop.permute.xlu0 %308 }
 0x11f   : > { %v313_v55 = vpop.permute.xlu2 %312  ;;  %v375_v56 = vsel %vm371_vm4, %v370_v53, %v271_v54  ;;  %v398_v39 = vsel %vm226_vm0, %v309_v0, %v1018_v28 }
 0x120   : > { %427 = vst [vmem:[%s1029_s9 + $0x48] sm:$0xff] %v375_v56 }
 0x126   : > { %v281_v59 = vpop.permute.xlu1 %280  ;;  %v315_v11 = vpop.permute.xlu0 %314 }
 0x127   : > { %v325_v60 = vpop.permute.xlu2 %324  ;;  %v378_v61 = vsel %vm226_vm0, %v234_v58, %v281_v59  ;;  %v401_v46 = vsel %vm226_vm0, %v315_v11, %v1018_v28 }
 0x128   : > { %v382_v62 = vsel %vm361_vm2, %v378_v61, %v1016_v26  ;;  %v402_v41 = vsel %vm356_vm1, %v398_v39, %v325_v60 }
 0x129   : > { %v387_v63 = vsel %vm384_vm5, %v382_v62, %v297_v57  ;;  %v406_v42 = vsel %vm384_vm5, %v402_v41, %v1020_v29 }
 0x12a   : > { %v391_v2 = vsel %vm371_vm4, %v387_v63, %v1014_v23 }
 0x12b   : > { %v396_v1 = vsel %vm393_vm6, %v391_v2, %v313_v55 }
 0x12c   : > { %425 = vst [vmem:[%s1029_s9 + $0x38] sm:$0xff] %v396_v1 }
 0x12e   : > { %v293_v5 = vpop.permute.xlu1 %292  ;;  %v327_v21 = vpop.permute.xlu0 %326 }
 0x12f   : > { %v331_v6 = vpop.permute.xlu2 %330  ;;  %v385_v7 = vsel %vm384_vm5, %v380_v4, %v293_v5 }
 0x130   : > { %v389_v8 = vsel %vm371_vm4, %v385_v7, %v1014_v23  ;;  %v405_v47 = vsel %vm356_vm1, %v401_v46, %v331_v6 }
 0x131   : > { %v394_v9 = vsel %vm393_vm6, %v389_v8, %v309_v0  ;;  %v409_v48 = vsel %vm384_vm5, %v405_v47, %v1020_v29 }
 0x132   : > { %419 = vst [vmem:[%s1029_s9 + $0x8] sm:$0xff] %v394_v9 }
 0x136   : > { %v299_v13 = vpop.permute.xlu1 %298  ;;  %v345_v36 = vpop.permute.xlu0 %344 }
 0x137   : > { %v388_v15 = vsel %vm384_vm5, %v383_v12, %v299_v13  ;;  %v343_v16 = vpop.permute.xlu2 %342 }
 0x138   : > { %v392_v17 = vsel %vm371_vm4, %v388_v15, %v1014_v23  ;;  %v400_v23 = vsel %vm226_vm0, %v313_v55, %v1018_v28 }
 0x139   : > { %v397_v18 = vsel %vm393_vm6, %v392_v17, %v315_v11 }
 0x13a   : > { %428 = vst [vmem:[%s1029_s9 + $0x50] sm:$0xff] %v397_v18 }
 0x13e   : > { %v311_v24 = vpop.permute.xlu1 %310 }
 0x13f   : > { %v395_v25 = vsel %vm393_vm6, %v390_v22, %v311_v24  ;;  %v399_v27 = vsel %vm226_vm0, %v311_v24, %v1018_v28  ;;  %v354_v31 = vpop.permute.xlu2 %353 }
 0x140   : > { %v403_v30 = vsel %vm356_vm1, %v399_v27, %v327_v21  ;;  %422 = vst [vmem:[%s1029_s9 + $0x20] sm:$0xff] %v395_v25 }
 0x141   : > { %v407_v26 = vsel %vm384_vm5, %v403_v30, %v1020_v29 }
 0x142   : > { %v411_v32 = vsel %vm366_vm3, %v407_v26, %v343_v16 }
 0x143   : > { %v415_v33 = vsel %vm393_vm6, %v411_v32, %v354_v31 }
 0x144   : > { %423 = vst [vmem:[%s1029_s9 + $0x28] sm:$0xff] %v415_v33 }
 0x146   : > { %v329_v34 = vpop.permute.xlu1 %328 }
 0x147   : > { %v404_v35 = vsel %vm356_vm1, %v400_v23, %v329_v34 }
 0x148   : > { %v408_v37 = vsel %vm384_vm5, %v404_v35, %v1020_v29 }
 0x149   : > { %v412_v38 = vsel %vm366_vm3, %v408_v37, %v345_v36 }
 0x14a   : > { %v416_v40 = vsel %vm393_vm6, %v412_v38, %v354_v31 }
 0x14b   : > { %426 = vst [vmem:[%s1029_s9 + $0x40] sm:$0xff] %v416_v40 }
 0x14e   : > { %v341_v43 = vpop.permute.xlu1 %340 }
 0x14f   : > { %v410_v44 = vsel %vm366_vm3, %v406_v42, %v341_v43 }
 0x150   : > { %v414_v45 = vsel %vm393_vm6, %v410_v44, %v354_v31 }
 0x151   : > { %420 = vst [vmem:[%s1029_s9 + $0x10] sm:$0xff] %v414_v45 }
 0x156   : > { %v347_v49 = vpop.permute.xlu1 %346 }
 0x157   : > { %v413_v50 = vsel %vm366_vm3, %v409_v48, %v347_v49 }
 0x158   : > { %v417_v51 = vsel %vm393_vm6, %v413_v50, %v354_v31 }
 0x159   : > { %429 = vst [vmem:[%s1029_s9 + $0x58] sm:$0xff] %v417_v51 }
 0x15a   : > { %768 = shalt.err (!%p765_p7)
}
 0x15b   : > { %s839_s6 = smov 384   ;;  %s840_s7 = smov 24  }
 0x15c   : > { %568 = dma.vmem_to_hbm [thread:$0]  (%p901_p4), %s447_s15, 1536, %s449_s21, %s431_s23, %s839_s6, %s839_s6, %s840_s7  }
 0x15d PF: > { %p590_p9 = scmp.ge.s32.totalorder %s827_s17, 2  ;;  %s463_s8 = sand.u32 1, %s807_s12  }
 0x15e   : > { %s464_s9 = scalar_lea.sflag [#allocation4], %s463_s8 }
 0x15f   : > { %p581_p10 = pnand %p590_p9, %p908_p8 }
 0x161   : > { %p582_p11 = pneg %p581_p10 }
 0x163   : > { %802 = dma.done.wait (%p582_p11), %s464_s9, 1536  }
 0x164   : > { %804 = vsyncadd (%p582_p11), %s464_s9, 4294965760  ;;  %s18_s17 = sadd.s32 1, %s827_s17   ;;  %s1162_s12 = smov %s811_s13 }
 0x165   : > { %p15_p12 = scmp.ge.s32.totalorder %s18_s17, 4   ;;  %s1163_s13 = smov %s815_s14 }
 0x166   : > { %s1164_s14 = smov %s914_s25  ;;  %s1165_s15 = smov %s823_s16 }
 0x167   : > { %s1166_s16 = smov %s1168_s20  ;;  %17 = sbr.rel (!%p15_p12) target bundleno = 6 (0x6), region = 77 }
 0x16c   :  { %470 = vsyncpa [#allocation3], 1 }
 0x16d   :  { %472 = vsyncpa [#allocation3 + $0x1], 1 }
 0x16e   :  { %473 = vsyncpa [#allocation6], 1 }
 0x16f   :  { %474 = vsyncpa [#allocation4], 1 }
 0x170   :  { %476 = vsyncpa [#allocation4 + $0x1], 1 }

</bundles_post_ra>
